<compile_context>
chip_gen: v5e
topology: v5e:2x2
jax: 0.10.0
libtpu: 0.0.40
codegen_flags: <defaults>
</compile_context>

<pallas_src>
import jax
import jax.numpy as jnp
from jax.experimental import pallas as pl
from jax.experimental.pallas import tpu as pltpu

GROUP = 32            # samples packed per row of the kernel's view
IN_W = 4 * GROUP      # 128 input lanes per row
HID_W = 16 * GROUP    # 512 hidden lanes per row
OUT_W = 3 * GROUP     # 96 output lanes per row


def _round_up(a, b):
    return (a + b - 1) // b * b


def _mlp_kernel(x_ref, w1_ref, b1_ref, w2_ref, b2_ref, w3_ref, b3_ref, o_ref):
    cd = w1_ref.dtype                                   # MXU operand dtype
    x = x_ref[...].astype(cd)                           # [br, 128]

    # fc1 + relu : [br, 512]
    h1 = jnp.dot(x, w1_ref[...], preferred_element_type=jnp.float32)
    h1 = jnp.maximum(h1 + b1_ref[...], 0.0)

    # fc2 + relu : [br, 512]
    h2 = jnp.dot(h1.astype(cd), w2_ref[...], preferred_element_type=jnp.float32)
    h2 = jnp.maximum(h2 + b2_ref[...], 0.0)

    # fc3 + tanh : [br, 96]  (lane-dense store, 96/128 lanes)
    h3 = jnp.dot(h2.astype(cd), w3_ref[...], preferred_element_type=jnp.float32)
    o_ref[...] = jnp.tanh(h3 + b3_ref[...]).astype(o_ref.dtype)


def ai_thruster_forward(x, params, *, block_rows=2048,
                        mxu_dtype=jnp.bfloat16, out_dtype=None):
    """x: [B, 4] -> [B, 3].

    Zero-copy path requires B % 32 == 0 and B >= 256; otherwise x is padded
    (small/ragged batches only).  block_rows is in units of 32-sample rows.
    """
    w1, b1, w2, b2, w3, b3 = params      # PyTorch layout: W [out, in], b [out]
    B, F = x.shape
    assert F == 4
    out_dtype = x.dtype if out_dtype is None else out_dtype

    # ---- free views of x / out (pad only if B ragged or tiny) -------------
    Bp = max(_round_up(B, GROUP), 8 * GROUP)
    if Bp != B:
        x = jnp.pad(x, ((0, Bp - B), (0, 0)))
    R = Bp // GROUP
    x_view = x.reshape(R, IN_W)                          # contiguous => bitcast

    # ---- block-diagonal weights / tiled biases (tiny, built once) ---------
    eye = jnp.eye(GROUP, dtype=jnp.float32)
    w1_bd = jnp.kron(eye, jnp.transpose(w1).astype(jnp.float32)).astype(mxu_dtype)  # [128, 512]
    w2_bd = jnp.kron(eye, jnp.transpose(w2).astype(jnp.float32)).astype(mxu_dtype)  # [512, 512]
    w3_bd = jnp.kron(eye, jnp.transpose(w3).astype(jnp.float32)).astype(mxu_dtype)  # [512,  96]
    b1_t = jnp.tile(b1.astype(jnp.float32), GROUP).reshape(1, HID_W)
    b2_t = jnp.tile(b2.astype(jnp.float32), GROUP).reshape(1, HID_W)
    b3_t = jnp.tile(b3.astype(jnp.float32), GROUP).reshape(1, OUT_W)

    # ---- tile size: large steps, sublane-aligned, last block ragged -------
    br = min(int(block_rows), (R // 8) * 8)
    br = max(8, (br // 8) * 8)
    n_blk = pl.cdiv(R, br)
    # v7x megacore: keep >= 2 grid steps when there is enough work.
    if n_blk == 1 and R >= 16:
        br = ((R + 1) // 2 + 7) // 8 * 8
        n_blk = pl.cdiv(R, br)

    # ~16 KiB VMEM per row of work (f32+bf16 activations, double-buffered
    # in/out blocks, resident weights); cap below v7x's 64 MiB physical.
    vmem_limit = int(min(48 << 20, max(24 << 20, 16 * 1024 * br + (4 << 20))))

    resident = lambda a: pl.BlockSpec(a.shape, lambda i: (0, 0))

    flops = 2 * R * (IN_W * HID_W + HID_W * HID_W + HID_W * OUT_W) \
        + R * (2 * HID_W + OUT_W + 2 * HID_W)
    bytes_accessed = (x_view.size * x_view.dtype.itemsize
                      + R * OUT_W * jnp.dtype(out_dtype).itemsize
                      + sum(int(a.size) * a.dtype.itemsize
                            for a in (w1_bd, w2_bd, w3_bd, b1_t, b2_t, b3_t)))

    out_view = pl.pallas_call(
        _mlp_kernel,
        out_shape=jax.ShapeDtypeStruct((R, OUT_W), out_dtype),
        grid=(n_blk,),
        in_specs=[
            pl.BlockSpec((br, IN_W), lambda i: (i, 0)),
            resident(w1_bd), resident(b1_t),
            resident(w2_bd), resident(b2_t),
            resident(w3_bd), resident(b3_t),
        ],
        out_specs=pl.BlockSpec((br, OUT_W), lambda i: (i, 0)),
        compiler_params=pltpu.CompilerParams(
            dimension_semantics=("parallel",),
            vmem_limit_bytes=vmem_limit),
        cost_estimate=pl.CostEstimate(
            flops=int(flops),
            transcendentals=int(R * OUT_W),
            bytes_accessed=int(bytes_accessed)),
    )(x_view, w1_bd, b1_t, w2_bd, b2_t, w3_bd, b3_t)

    out = out_view.reshape(Bp, 3)                        # contiguous => bitcast
    if Bp != B:
        out = out[:B]
    return out


def init_params(key):
    """Deterministic init matching the PyTorch module's shapes ([out, in])."""
    ks = jax.random.split(key, 6)

    def linear(kw, kb, fan_in, fan_out):
        bound = 1.0 / jnp.sqrt(fan_in)
        w = jax.random.uniform(kw, (fan_out, fan_in), jnp.float32, -bound, bound)
        b = jax.random.uniform(kb, (fan_out,), jnp.float32, -bound, bound)
        return w, b

    w1, b1 = linear(ks[0], ks[1], 4, 16)
    w2, b2 = linear(ks[2], ks[3], 16, 16)
    w3, b3 = linear(ks[4], ks[5], 16, 3)
    return (w1, b1, w2, b2, w3, b3)


def reference_forward(x, params, compute_dtype=jnp.float32):
    """Pure-JAX reference (PyTorch semantics). compute_dtype mirrors the
    kernel's MXU-operand cast (f32 accumulation either way)."""
    w1, b1, w2, b2, w3, b3 = params
    c = lambda a: a.astype(compute_dtype)
    h = jnp.maximum(jnp.dot(c(x), c(w1).T, preferred_element_type=jnp.float32) + b1, 0.0)
    h = jnp.maximum(jnp.dot(c(h), c(w2).T, preferred_element_type=jnp.float32) + b2, 0.0)
    return jnp.tanh(jnp.dot(c(h), c(w3).T, preferred_element_type=jnp.float32) + b3)


if __name__ == "__main__":
    key = jax.random.PRNGKey(0)
    k_params, k_x1, k_x2 = jax.random.split(key, 3)
    params = init_params(k_params)

    # 1) f32 MXU mode on the zero-copy path (B = 256): exact vs f32 reference.
    x1 = jax.random.normal(k_x1, (256, 4), dtype=jnp.float32)
    out1 = jax.block_until_ready(
        ai_thruster_forward(x1, params, mxu_dtype=jnp.float32))
    ref1 = reference_forward(x1, params)
    assert out1.shape == (256, 3)
    assert jnp.allclose(out1, ref1, atol=2e-5, rtol=2e-5)

    # 2) default bf16-MXU mode on a ragged batch (B=300 -> padded to 320,
    #    8-row blocks, ragged last grid block): compare to a reference with
    #    the same bf16 operand quantization, plus a loose f32-semantics check.
    x2 = jax.random.normal(k_x2, (300, 4), dtype=jnp.float32)
    out2 = jax.block_until_ready(ai_thruster_forward(x2, params))
    ref2_q = reference_forward(x2, params, compute_dtype=jnp.bfloat16)
    ref2 = reference_forward(x2, params)
    assert out2.shape == (300, 3)
    assert jnp.allclose(out2, ref2_q, atol=1e-2, rtol=1e-2)
    assert jnp.allclose(out2, ref2, atol=6e-2, rtol=6e-2)

    # 3) bf16 output dtype (halves output HBM bytes; tanh output in [-1, 1]).
    out3 = jax.block_until_ready(
        ai_thruster_forward(x2, params, out_dtype=jnp.bfloat16))
    assert out3.dtype == jnp.bfloat16
    assert jnp.allclose(out3.astype(jnp.float32), ref2_q, atol=2e-2, rtol=2e-2)

    print("KERNEL_OK")
</pallas_src>

<mosaic_0001>
module attributes {stable_mosaic.version = 11 : i64} {
  func.func @_mlp_kernel(%arg0: i32, %arg1: memref<8x128xf32, #tpu.memory_space<vmem>>, %arg2: memref<128x512xf32, #tpu.memory_space<vmem>>, %arg3: memref<1x512xf32, #tpu.memory_space<vmem>>, %arg4: memref<512x512xf32, #tpu.memory_space<vmem>>, %arg5: memref<1x512xf32, #tpu.memory_space<vmem>>, %arg6: memref<512x96xf32, #tpu.memory_space<vmem>>, %arg7: memref<1x96xf32, #tpu.memory_space<vmem>>, %arg8: memref<8x96xf32, #tpu.memory_space<vmem>>) attributes {dimension_semantics = [#tpu.dimension_semantics<parallel>], iteration_bounds = array<i64: 1>, scalar_prefetch = 0 : i64, scratch_operands = 0 : i64, tpu.core_type = #tpu.core_type<tc>, window_params = [{transform_indices = @transform_0, window_bounds = array<i64: 8, 128>}, {pipeline_mode = #tpu.pipeline_mode<synchronous>, transform_indices = @transform_1, window_bounds = array<i64: 128, 512>}, {pipeline_mode = #tpu.pipeline_mode<synchronous>, transform_indices = @transform_2, window_bounds = array<i64: 1, 512>}, {pipeline_mode = #tpu.pipeline_mode<synchronous>, transform_indices = @transform_3, window_bounds = array<i64: 512, 512>}, {pipeline_mode = #tpu.pipeline_mode<synchronous>, transform_indices = @transform_4, window_bounds = array<i64: 1, 512>}, {pipeline_mode = #tpu.pipeline_mode<synchronous>, transform_indices = @transform_5, window_bounds = array<i64: 512, 96>}, {pipeline_mode = #tpu.pipeline_mode<synchronous>, transform_indices = @transform_6, window_bounds = array<i64: 1, 96>}, {transform_indices = @transform_7, window_bounds = array<i64: 8, 96>}]} {
    %c0 = arith.constant 0 : index
    %c0_0 = arith.constant 0 : index
    %0 = vector.load %arg1[%c0, %c0_0] : memref<8x128xf32, #tpu.memory_space<vmem>>, vector<8x128xf32>
    %c0_1 = arith.constant 0 : index
    %c0_2 = arith.constant 0 : index
    %1 = vector.load %arg2[%c0_1, %c0_2] : memref<128x512xf32, #tpu.memory_space<vmem>>, vector<128x512xf32>
    %cst = arith.constant dense<0.000000e+00> : vector<8x512xf32>
    %2 = tpu.matmul %0, %1, %cst {dimension_numbers = #tpu.dot_dimension_numbers<[1], [0], [0], [1], [0, 0, 1, 1], [], []>} : vector<8x128xf32>, vector<128x512xf32>, vector<8x512xf32> -> vector<8x512xf32>
    %c0_3 = arith.constant 0 : index
    %c0_4 = arith.constant 0 : index
    %3 = vector.load %arg3[%c0_3, %c0_4] : memref<1x512xf32, #tpu.memory_space<vmem>>, vector<1x512xf32>
    %4 = vector.broadcast %3 : vector<1x512xf32> to vector<8x512xf32>
    %5 = arith.addf %2, %4 : vector<8x512xf32>
    %cst_5 = arith.constant 0.000000e+00 : f32
    %6 = vector.broadcast %cst_5 : f32 to vector<8x512xf32>
    %7 = arith.maximumf %5, %6 : vector<8x512xf32>
    %c0_6 = arith.constant 0 : index
    %c0_7 = arith.constant 0 : index
    %8 = vector.load %arg4[%c0_6, %c0_7] : memref<512x512xf32, #tpu.memory_space<vmem>>, vector<512x512xf32>
    %cst_8 = arith.constant dense<0.000000e+00> : vector<8x512xf32>
    %9 = tpu.matmul %7, %8, %cst_8 {dimension_numbers = #tpu.dot_dimension_numbers<[1], [0], [0], [1], [0, 0, 1, 1], [], []>} : vector<8x512xf32>, vector<512x512xf32>, vector<8x512xf32> -> vector<8x512xf32>
    %c0_9 = arith.constant 0 : index
    %c0_10 = arith.constant 0 : index
    %10 = vector.load %arg5[%c0_9, %c0_10] : memref<1x512xf32, #tpu.memory_space<vmem>>, vector<1x512xf32>
    %11 = vector.broadcast %10 : vector<1x512xf32> to vector<8x512xf32>
    %12 = arith.addf %9, %11 : vector<8x512xf32>
    %cst_11 = arith.constant 0.000000e+00 : f32
    %13 = vector.broadcast %cst_11 : f32 to vector<8x512xf32>
    %14 = arith.maximumf %12, %13 : vector<8x512xf32>
    %c0_12 = arith.constant 0 : index
    %c0_13 = arith.constant 0 : index
    %15 = vector.load %arg6[%c0_12, %c0_13] : memref<512x96xf32, #tpu.memory_space<vmem>>, vector<512x96xf32>
    %cst_14 = arith.constant dense<0.000000e+00> : vector<8x96xf32>
    %16 = tpu.matmul %14, %15, %cst_14 {dimension_numbers = #tpu.dot_dimension_numbers<[1], [0], [0], [1], [0, 0, 1, 1], [], []>} : vector<8x512xf32>, vector<512x96xf32>, vector<8x96xf32> -> vector<8x96xf32>
    %c0_15 = arith.constant 0 : index
    %c0_16 = arith.constant 0 : index
    %17 = vector.load %arg7[%c0_15, %c0_16] : memref<1x96xf32, #tpu.memory_space<vmem>>, vector<1x96xf32>
    %18 = vector.broadcast %17 : vector<1x96xf32> to vector<8x96xf32>
    %19 = arith.addf %16, %18 : vector<8x96xf32>
    %20 = math.tanh %19 : vector<8x96xf32>
    %c0_17 = arith.constant 0 : index
    %c0_18 = arith.constant 0 : index
    %21 = vector.load %arg8[%c0_17, %c0_18] : memref<8x96xf32, #tpu.memory_space<vmem>>, vector<8x96xf32>
    tpu.vector_store %arg8[%c0_17, %c0_18], %20 {strides = array<i32>} : memref<8x96xf32, #tpu.memory_space<vmem>>, vector<8x96xf32>,
    return
  }
  func.func @transform_0(%arg0: i32) -> (i32, i32) {
    %c0_i32 = arith.constant 0 : i32
    %c0_i32_0 = arith.constant 0 : i32
    return %arg0, %c0_i32 : i32, i32
  }
  func.func @transform_1(%arg0: i32) -> (i32, i32) {
    %c0_i32 = arith.constant 0 : i32
    %c0_i32_0 = arith.constant 0 : i32
    %c0_i32_1 = arith.constant 0 : i32
    return %c0_i32, %c0_i32_0 : i32, i32
  }
  func.func @transform_2(%arg0: i32) -> (i32, i32) {
    %c0_i32 = arith.constant 0 : i32
    %c0_i32_0 = arith.constant 0 : i32
    %c0_i32_1 = arith.constant 0 : i32
    return %c0_i32, %c0_i32_0 : i32, i32
  }
  func.func @transform_3(%arg0: i32) -> (i32, i32) {
    %c0_i32 = arith.constant 0 : i32
    %c0_i32_0 = arith.constant 0 : i32
    %c0_i32_1 = arith.constant 0 : i32
    return %c0_i32, %c0_i32_0 : i32, i32
  }
  func.func @transform_4(%arg0: i32) -> (i32, i32) {
    %c0_i32 = arith.constant 0 : i32
    %c0_i32_0 = arith.constant 0 : i32
    %c0_i32_1 = arith.constant 0 : i32
    return %c0_i32, %c0_i32_0 : i32, i32
  }
  func.func @transform_5(%arg0: i32) -> (i32, i32) {
    %c0_i32 = arith.constant 0 : i32
    %c0_i32_0 = arith.constant 0 : i32
    %c0_i32_1 = arith.constant 0 : i32
    return %c0_i32, %c0_i32_0 : i32, i32
  }
  func.func @transform_6(%arg0: i32) -> (i32, i32) {
    %c0_i32 = arith.constant 0 : i32
    %c0_i32_0 = arith.constant 0 : i32
    %c0_i32_1 = arith.constant 0 : i32
    return %c0_i32, %c0_i32_0 : i32, i32
  }
  func.func @transform_7(%arg0: i32) -> (i32, i32) {
    %c0_i32 = arith.constant 0 : i32
    %c0_i32_0 = arith.constant 0 : i32
    return %arg0, %c0_i32 : i32, i32
  }
}

</mosaic_0001>

<bundles_post_ra>
// kernel: tpu_custom_call.1
= control target key start
LH: loop header
LB: loop body
LE: loop exit
PB: predicated region body
PF: predicated region fallthrough
CT: control target
= control target key end

     0   :  { %12 = vsyncpa [#allocation3], 0  ;;  %s1495_s0 = inlined_call_operand.vmem [shape: f32[8,128], index: 0, kind: input, shape index: {}]   ;;  %s1496_s1 = inlined_call_operand.vmem [shape: f32[128,512], index: 1, kind: input, shape index: {}]   ;;  %s1497_s2 = inlined_call_operand.vmem [shape: f32[1,512], index: 2, kind: input, shape index: {}]   ;;  %s1498_s3 = inlined_call_operand.hbm [shape: f32[512,512], index: 3, kind: input, shape index: {}]   ;;  %s1499_s4 = inlined_call_operand.vmem [shape: f32[1,512], index: 4, kind: input, shape index: {}]   ;;  %s1500_s5 = inlined_call_operand.vmem [shape: f32[512,96], index: 5, kind: input, shape index: {}]   ;;  %s1501_s6 = inlined_call_operand.vmem [shape: f32[1,96], index: 6, kind: input, shape index: {}]   ;;  %s1502_s7 = inlined_call_operand.hbm [shape: f32[8,96], index: 7, kind: output, shape index: {}]  }
   0x1   :  { %13 = vsyncpa [#allocation4], 0  ;;  %s24_s26 = sshll.u32 %s1498_s3, 4  ;;  %s1019_s27 = smov [#allocation2]   ;;  %s25_s26 = int_to_ptr.hbm [resolvable:$true] %s24_s26 }
   0x2   :  { %s26_s28 = sshll.u32 %s1019_s27, 4  ;;  %s1020_s29 = smov 512   ;;  %s27_s28 = int_to_ptr.vmem [resolvable:$true] %s26_s28 }
   0x3   :  { %s1021_s30 = smov 32  }
   0x4   :  { %32 = dma.hbm_to_vmem [thread:$0]  %s25_s26, 32768, %s27_s28, [#allocation3], %s1020_s29, %s1020_s29, %s1021_s30  }
   0x5   :  { %1015 = dma.done.wait [#allocation3], 32768  }
   0x6   :  { %1016 = vsyncadd [#allocation3], 4294934528  ;;  %v104_v0 = vld [vmem:[%s1496_s1 + $0x1e0] sm:$0xff]  ;;  %v105_v1 = vld [vmem:[%s1496_s1 + $0x1e8] sm:$0xff]  ;;  %s950_s16 = sshll.u32 %s1502_s7, 4  ;;  %vm941_vm0 = vcmask 785408   ;;  %s951_s16 = int_to_ptr.hbm [resolvable:$true] %s950_s16 }
   0x7   :  { %v106_v2 = vld [vmem:[%s1496_s1 + $0x1f0] sm:$0xff]  ;;  %118 = vmatpush.msra.mxu0 %v104_v0  ;;  %138 = vmatpush.msra.mxu1 %v105_v1  ;;  %v107_v3 = vld [vmem:[%s1496_s1 + $0x1f8] sm:$0xff]  ;;  %v100_v4 = vld [vmem:[%s1496_s1 + $0x1c0] sm:$0xff] }
   0x8   :  { %v101_v5 = vld [vmem:[%s1496_s1 + $0x1c8] sm:$0xff]  ;;  %158 = vmatpush.msra.mxu2 %v106_v2  ;;  %178 = vmatpush.msra.mxu3 %v107_v3  ;;  %v102_v6 = vld [vmem:[%s1496_s1 + $0x1d0] sm:$0xff]  ;;  %v103_v7 = vld [vmem:[%s1496_s1 + $0x1d8] sm:$0xff] }
   0x9   :  { %v96_v8 = vld [vmem:[%s1496_s1 + $0x1a0] sm:$0xff]  ;;  %119 = vmatpush.msra.mxu0 %v100_v4  ;;  %139 = vmatpush.msra.mxu1 %v101_v5  ;;  %v97_v9 = vld [vmem:[%s1496_s1 + $0x1a8] sm:$0xff]  ;;  %v98_v10 = vld [vmem:[%s1496_s1 + $0x1b0] sm:$0xff] }
   0xa   :  { %v99_v11 = vld [vmem:[%s1496_s1 + $0x1b8] sm:$0xff]  ;;  %159 = vmatpush.msra.mxu2 %v102_v6  ;;  %179 = vmatpush.msra.mxu3 %v103_v7  ;;  %v92_v12 = vld [vmem:[%s1496_s1 + $0x180] sm:$0xff]  ;;  %v93_v13 = vld [vmem:[%s1496_s1 + $0x188] sm:$0xff] }
   0xb   :  { %120 = vmatpush.msra.mxu0 %v96_v8  ;;  %140 = vmatpush.msra.mxu1 %v97_v9  ;;  %v94_v14 = vld [vmem:[%s1496_s1 + $0x190] sm:$0xff]  ;;  %v95_v15 = vld [vmem:[%s1496_s1 + $0x198] sm:$0xff]  ;;  %v88_v16 = vld [vmem:[%s1496_s1 + $0x160] sm:$0xff] }
   0xc   :  { %160 = vmatpush.msra.mxu2 %v98_v10  ;;  %180 = vmatpush.msra.mxu3 %v99_v11  ;;  %v89_v17 = vld [vmem:[%s1496_s1 + $0x168] sm:$0xff]  ;;  %v90_v18 = vld [vmem:[%s1496_s1 + $0x170] sm:$0xff]  ;;  %v91_v19 = vld [vmem:[%s1496_s1 + $0x178] sm:$0xff] }
   0xd   :  { %121 = vmatpush.msra.mxu0 %v92_v12  ;;  %141 = vmatpush.msra.mxu1 %v93_v13  ;;  %v84_v20 = vld [vmem:[%s1496_s1 + $0x140] sm:$0xff]  ;;  %v85_v21 = vld [vmem:[%s1496_s1 + $0x148] sm:$0xff]  ;;  %v86_v22 = vld [vmem:[%s1496_s1 + $0x150] sm:$0xff] }
   0xe   :  { %161 = vmatpush.msra.mxu2 %v94_v14  ;;  %181 = vmatpush.msra.mxu3 %v95_v15  ;;  %v87_v23 = vld [vmem:[%s1496_s1 + $0x158] sm:$0xff]  ;;  %v80_v24 = vld [vmem:[%s1496_s1 + $0x120] sm:$0xff]  ;;  %v81_v25 = vld [vmem:[%s1496_s1 + $0x128] sm:$0xff] }
   0xf   :  { %122 = vmatpush.msra.mxu0 %v88_v16  ;;  %142 = vmatpush.msra.mxu1 %v89_v17  ;;  %v82_v26 = vld [vmem:[%s1496_s1 + $0x130] sm:$0xff]  ;;  %v83_v27 = vld [vmem:[%s1496_s1 + $0x138] sm:$0xff]  ;;  %v76_v28 = vld [vmem:[%s1496_s1 + $0x100] sm:$0xff] }
  0x10   :  { %162 = vmatpush.msra.mxu2 %v90_v18  ;;  %182 = vmatpush.msra.mxu3 %v91_v19  ;;  %v77_v29 = vld [vmem:[%s1496_s1 + $0x108] sm:$0xff]  ;;  %v78_v30 = vld [vmem:[%s1496_s1 + $0x110] sm:$0xff]  ;;  %v79_v31 = vld [vmem:[%s1496_s1 + $0x118] sm:$0xff] }
  0x11   :  { %123 = vmatpush.msra.mxu0 %v84_v20  ;;  %143 = vmatpush.msra.mxu1 %v85_v21  ;;  %v72_v32 = vld [vmem:[%s1496_s1 + $0xe0] sm:$0xff]  ;;  %v73_v33 = vld [vmem:[%s1496_s1 + $0xe8] sm:$0xff]  ;;  %v74_v34 = vld [vmem:[%s1496_s1 + $0xf0] sm:$0xff] }
  0x12   :  { %163 = vmatpush.msra.mxu2 %v86_v22  ;;  %183 = vmatpush.msra.mxu3 %v87_v23  ;;  %v75_v35 = vld [vmem:[%s1496_s1 + $0xf8] sm:$0xff]  ;;  %v68_v36 = vld [vmem:[%s1496_s1 + $0xc0] sm:$0xff]  ;;  %v69_v37 = vld [vmem:[%s1496_s1 + $0xc8] sm:$0xff] }
  0x13   :  { %124 = vmatpush.msra.mxu0 %v80_v24  ;;  %144 = vmatpush.msra.mxu1 %v81_v25  ;;  %v70_v38 = vld [vmem:[%s1496_s1 + $0xd0] sm:$0xff]  ;;  %v71_v39 = vld [vmem:[%s1496_s1 + $0xd8] sm:$0xff]  ;;  %v64_v40 = vld [vmem:[%s1496_s1 + $0xa0] sm:$0xff] }
  0x14   :  { %164 = vmatpush.msra.mxu2 %v82_v26  ;;  %184 = vmatpush.msra.mxu3 %v83_v27  ;;  %v65_v41 = vld [vmem:[%s1496_s1 + $0xa8] sm:$0xff]  ;;  %v66_v42 = vld [vmem:[%s1496_s1 + $0xb0] sm:$0xff]  ;;  %v67_v43 = vld [vmem:[%s1496_s1 + $0xb8] sm:$0xff] }
  0x15   :  { %125 = vmatpush.msra.mxu0 %v76_v28  ;;  %145 = vmatpush.msra.mxu1 %v77_v29  ;;  %v60_v44 = vld [vmem:[%s1496_s1 + $0x80] sm:$0xff]  ;;  %v61_v45 = vld [vmem:[%s1496_s1 + $0x88] sm:$0xff]  ;;  %v62_v46 = vld [vmem:[%s1496_s1 + $0x90] sm:$0xff] }
  0x16   :  { %165 = vmatpush.msra.mxu2 %v78_v30  ;;  %185 = vmatpush.msra.mxu3 %v79_v31  ;;  %v63_v47 = vld [vmem:[%s1496_s1 + $0x98] sm:$0xff]  ;;  %v56_v48 = vld [vmem:[%s1496_s1 + $0x60] sm:$0xff]  ;;  %v57_v49 = vld [vmem:[%s1496_s1 + $0x68] sm:$0xff] }
  0x17   :  { %126 = vmatpush.msra.mxu0 %v72_v32  ;;  %146 = vmatpush.msra.mxu1 %v73_v33  ;;  %v58_v50 = vld [vmem:[%s1496_s1 + $0x70] sm:$0xff]  ;;  %v59_v51 = vld [vmem:[%s1496_s1 + $0x78] sm:$0xff]  ;;  %v52_v52 = vld [vmem:[%s1496_s1 + $0x40] sm:$0xff] }
  0x18   :  { %166 = vmatpush.msra.mxu2 %v74_v34  ;;  %186 = vmatpush.msra.mxu3 %v75_v35  ;;  %v53_v53 = vld [vmem:[%s1496_s1 + $0x48] sm:$0xff]  ;;  %v54_v54 = vld [vmem:[%s1496_s1 + $0x50] sm:$0xff]  ;;  %v55_v55 = vld [vmem:[%s1496_s1 + $0x58] sm:$0xff] }
  0x19   :  { %127 = vmatpush.msra.mxu0 %v68_v36  ;;  %147 = vmatpush.msra.mxu1 %v69_v37  ;;  %v48_v56 = vld [vmem:[%s1496_s1 + $0x20] sm:$0xff]  ;;  %v49_v57 = vld [vmem:[%s1496_s1 + $0x28] sm:$0xff]  ;;  %v50_v58 = vld [vmem:[%s1496_s1 + $0x30] sm:$0xff] }
  0x1a   :  { %167 = vmatpush.msra.mxu2 %v70_v38  ;;  %187 = vmatpush.msra.mxu3 %v71_v39  ;;  %v51_v59 = vld [vmem:[%s1496_s1 + $0x38] sm:$0xff]  ;;  %v44_v60 = vld [vmem:[%s1496_s1] sm:$0xff]  ;;  %v45_v61 = vld [vmem:[%s1496_s1 + $0x8] sm:$0xff] }
  0x1b   :  { %128 = vmatpush.msra.mxu0 %v64_v40  ;;  %148 = vmatpush.msra.mxu1 %v65_v41  ;;  %v46_v62 = vld [vmem:[%s1496_s1 + $0x10] sm:$0xff]  ;;  %v47_v63 = vld [vmem:[%s1496_s1 + $0x18] sm:$0xff]  ;;  %v43_v0 = vld [vmem:[%s1495_s0] sm:$0xff] }
  0x1c   :  { %168 = vmatpush.msra.mxu2 %v66_v42  ;;  %188 = vmatpush.msra.mxu3 %v67_v43  ;;  %v262_v1 = vld [vmem:[#allocation2 + $0x1e0] sm:$0xff] }
  0x1d   :  { %129 = vmatpush.msra.mxu0 %v60_v44  ;;  %149 = vmatpush.msra.mxu1 %v61_v45  ;;  %v326_v2 = vld [vmem:[#allocation2 + $0x3e0] sm:$0xff] }
  0x1e   :  { %169 = vmatpush.msra.mxu2 %v62_v46  ;;  %189 = vmatpush.msra.mxu3 %v63_v47  ;;  %v390_v3 = vld [vmem:[#allocation2 + $0x5e0] sm:$0xff] }
  0x1f   :  { %130 = vmatpush.msra.mxu0 %v56_v48  ;;  %150 = vmatpush.msra.mxu1 %v57_v49  ;;  %v454_v4 = vld [vmem:[#allocation2 + $0x7e0] sm:$0xff] }
  0x20   :  { %170 = vmatpush.msra.mxu2 %v58_v50  ;;  %190 = vmatpush.msra.mxu3 %v59_v51  ;;  %v258_v5 = vld [vmem:[#allocation2 + $0x1c0] sm:$0xff] }
  0x21   :  { %131 = vmatpush.msra.mxu0 %v52_v52  ;;  %151 = vmatpush.msra.mxu1 %v53_v53  ;;  %v322_v6 = vld [vmem:[#allocation2 + $0x3c0] sm:$0xff] }
  0x22   :  { %171 = vmatpush.msra.mxu2 %v54_v54  ;;  %191 = vmatpush.msra.mxu3 %v55_v55  ;;  %v386_v7 = vld [vmem:[#allocation2 + $0x5c0] sm:$0xff] }
  0x23   :  { %132 = vmatpush.msra.mxu0 %v48_v56  ;;  %152 = vmatpush.msra.mxu1 %v49_v57  ;;  %v450_v8 = vld [vmem:[#allocation2 + $0x7c0] sm:$0xff] }
  0x24   :  { %172 = vmatpush.msra.mxu2 %v50_v58  ;;  %192 = vmatpush.msra.mxu3 %v51_v59  ;;  %v254_v9 = vld [vmem:[#allocation2 + $0x1a0] sm:$0xff] }
  0x25   :  { %133 = vmatpush.msra.mxu0 %v44_v60  ;;  %153 = vmatpush.msra.mxu1 %v45_v61  ;;  %v318_v10 = vld [vmem:[#allocation2 + $0x3a0] sm:$0xff] }
  0x26   :  { %173 = vmatpush.msra.mxu2 %v46_v62  ;;  %193 = vmatpush.msra.mxu3 %v47_v63  ;;  %v382_v11 = vld [vmem:[#allocation2 + $0x5a0] sm:$0xff]  ;;  %v263_v63 = vld [vmem:[#allocation2 + $0x1e8] sm:$0xff] }
  0x27   :  { %134 = vmatmul.f32.vlgmr.msra.gmra.mxu0 %v43_v0  ;;  %154 = vmatmul.f32.vlgmr.msra.gmra.mxu1 %v43_v0  ;;  %v446_v12 = vld [vmem:[#allocation2 + $0x7a0] sm:$0xff] }
  0x28   :  { %174 = vmatmul.f32.vlgmr.msra.gmra.mxu2 %v43_v0  ;;  %194 = vmatmul.f32.vlgmr.msra.gmra.mxu3 %v43_v0  ;;  %v250_v13 = vld [vmem:[#allocation2 + $0x180] sm:$0xff]  ;;  %v327_v0 = vld [vmem:[#allocation2 + $0x3e8] sm:$0xff] }
  0x29   :  { %468 = vmatpush.msrb.mxu0 %v262_v1  ;;  %488 = vmatpush.msrb.mxu1 %v326_v2  ;;  %v314_v14 = vld [vmem:[#allocation2 + $0x380] sm:$0xff] }
  0x2a   :  { %508 = vmatpush.msrb.mxu2 %v390_v3  ;;  %528 = vmatpush.msrb.mxu3 %v454_v4  ;;  %v378_v15 = vld [vmem:[#allocation2 + $0x580] sm:$0xff]  ;;  %v259_v3 = vld [vmem:[#allocation2 + $0x1c8] sm:$0xff] }
  0x2b   :  { %469 = vmatpush.msrb.mxu0 %v258_v5  ;;  %489 = vmatpush.msrb.mxu1 %v322_v6  ;;  %v442_v16 = vld [vmem:[#allocation2 + $0x780] sm:$0xff]  ;;  %v323_v4 = vld [vmem:[#allocation2 + $0x3c8] sm:$0xff] }
  0x2c   :  { %509 = vmatpush.msrb.mxu2 %v386_v7  ;;  %529 = vmatpush.msrb.mxu3 %v450_v8  ;;  %v246_v17 = vld [vmem:[#allocation2 + $0x160] sm:$0xff]  ;;  %v391_v5 = vld [vmem:[#allocation2 + $0x5e8] sm:$0xff] }
  0x2d   :  { %470 = vmatpush.msrb.mxu0 %v254_v9  ;;  %490 = vmatpush.msrb.mxu1 %v318_v10  ;;  %v310_v18 = vld [vmem:[#allocation2 + $0x360] sm:$0xff]  ;;  %v455_v6 = vld [vmem:[#allocation2 + $0x7e8] sm:$0xff] }
  0x2e   :  { %510 = vmatpush.msrb.mxu2 %v382_v11  ;;  %530 = vmatpush.msrb.mxu3 %v446_v12  ;;  %v374_v19 = vld [vmem:[#allocation2 + $0x560] sm:$0xff]  ;;  %v255_v7 = vld [vmem:[#allocation2 + $0x1a8] sm:$0xff] }
  0x2f   :  { %471 = vmatpush.msrb.mxu0 %v250_v13  ;;  %491 = vmatpush.msrb.mxu1 %v314_v14  ;;  %v438_v20 = vld [vmem:[#allocation2 + $0x760] sm:$0xff]  ;;  %v319_v8 = vld [vmem:[#allocation2 + $0x3a8] sm:$0xff] }
  0x30   :  { %v242_v21 = vld [vmem:[#allocation2 + $0x140] sm:$0xff]  ;;  %511 = vmatpush.msrb.mxu2 %v378_v15  ;;  %531 = vmatpush.msrb.mxu3 %v442_v16  ;;  %v387_v9 = vld [vmem:[#allocation2 + $0x5c8] sm:$0xff] }
  0x31   :  { %v306_v22 = vld [vmem:[#allocation2 + $0x340] sm:$0xff]  ;;  %472 = vmatpush.msrb.mxu0 %v246_v17  ;;  %492 = vmatpush.msrb.mxu1 %v310_v18  ;;  %v451_v10 = vld [vmem:[#allocation2 + $0x7c8] sm:$0xff] }
  0x32   :  { %v370_v23 = vld [vmem:[#allocation2 + $0x540] sm:$0xff]  ;;  %512 = vmatpush.msrb.mxu2 %v374_v19  ;;  %532 = vmatpush.msrb.mxu3 %v438_v20  ;;  %v251_v11 = vld [vmem:[#allocation2 + $0x188] sm:$0xff] }
  0x33   :  { %v434_v24 = vld [vmem:[#allocation2 + $0x740] sm:$0xff]  ;;  %473 = vmatpush.msrb.mxu0 %v242_v21  ;;  %493 = vmatpush.msrb.mxu1 %v306_v22  ;;  %v315_v12 = vld [vmem:[#allocation2 + $0x388] sm:$0xff] }
  0x34   :  { %v238_v25 = vld [vmem:[#allocation2 + $0x120] sm:$0xff]  ;;  %513 = vmatpush.msrb.mxu2 %v370_v23  ;;  %533 = vmatpush.msrb.mxu3 %v434_v24  ;;  %v383_v13 = vld [vmem:[#allocation2 + $0x5a8] sm:$0xff] }
  0x35   :  { %v302_v26 = vld [vmem:[#allocation2 + $0x320] sm:$0xff]  ;;  %474 = vmatpush.msrb.mxu0 %v238_v25  ;;  %v447_v14 = vld [vmem:[#allocation2 + $0x7a8] sm:$0xff] }
  0x36   :  { %v366_v27 = vld [vmem:[#allocation2 + $0x520] sm:$0xff]  ;;  %494 = vmatpush.msrb.mxu1 %v302_v26  ;;  %v247_v15 = vld [vmem:[#allocation2 + $0x168] sm:$0xff] }
  0x37   :  { %v430_v28 = vld [vmem:[#allocation2 + $0x720] sm:$0xff]  ;;  %514 = vmatpush.msrb.mxu2 %v366_v27  ;;  %v311_v16 = vld [vmem:[#allocation2 + $0x368] sm:$0xff] }
  0x38   :  { %v234_v29 = vld [vmem:[#allocation2 + $0x100] sm:$0xff]  ;;  %534 = vmatpush.msrb.mxu3 %v430_v28  ;;  %v379_v17 = vld [vmem:[#allocation2 + $0x588] sm:$0xff] }
  0x39   :  { %v298_v30 = vld [vmem:[#allocation2 + $0x300] sm:$0xff]  ;;  %475 = vmatpush.msrb.mxu0 %v234_v29  ;;  %v443_v18 = vld [vmem:[#allocation2 + $0x788] sm:$0xff] }
  0x3a   :  { %v362_v31 = vld [vmem:[#allocation2 + $0x500] sm:$0xff]  ;;  %495 = vmatpush.msrb.mxu1 %v298_v30  ;;  %v243_v19 = vld [vmem:[#allocation2 + $0x148] sm:$0xff] }
  0x3b   :  { %v426_v32 = vld [vmem:[#allocation2 + $0x700] sm:$0xff]  ;;  %515 = vmatpush.msrb.mxu2 %v362_v31  ;;  %v307_v20 = vld [vmem:[#allocation2 + $0x348] sm:$0xff] }
  0x3c   :  { %v230_v33 = vld [vmem:[#allocation2 + $0xe0] sm:$0xff]  ;;  %535 = vmatpush.msrb.mxu3 %v426_v32  ;;  %v375_v21 = vld [vmem:[#allocation2 + $0x568] sm:$0xff] }
  0x3d   :  { %v294_v34 = vld [vmem:[#allocation2 + $0x2e0] sm:$0xff]  ;;  %476 = vmatpush.msrb.mxu0 %v230_v33  ;;  %v439_v22 = vld [vmem:[#allocation2 + $0x768] sm:$0xff] }
  0x3e   :  { %v358_v35 = vld [vmem:[#allocation2 + $0x4e0] sm:$0xff]  ;;  %496 = vmatpush.msrb.mxu1 %v294_v34  ;;  %v239_v23 = vld [vmem:[#allocation2 + $0x128] sm:$0xff] }
  0x3f   :  { %v422_v36 = vld [vmem:[#allocation2 + $0x6e0] sm:$0xff]  ;;  %516 = vmatpush.msrb.mxu2 %v358_v35  ;;  %v303_v24 = vld [vmem:[#allocation2 + $0x328] sm:$0xff] }
  0x40   :  { %v226_v37 = vld [vmem:[#allocation2 + $0xc0] sm:$0xff]  ;;  %536 = vmatpush.msrb.mxu3 %v422_v36  ;;  %v371_v25 = vld [vmem:[#allocation2 + $0x548] sm:$0xff] }
  0x41   :  { %v290_v38 = vld [vmem:[#allocation2 + $0x2c0] sm:$0xff]  ;;  %477 = vmatpush.msrb.mxu0 %v226_v37  ;;  %v435_v26 = vld [vmem:[#allocation2 + $0x748] sm:$0xff] }
  0x42   :  { %v354_v39 = vld [vmem:[#allocation2 + $0x4c0] sm:$0xff]  ;;  %497 = vmatpush.msrb.mxu1 %v290_v38  ;;  %v235_v27 = vld [vmem:[#allocation2 + $0x108] sm:$0xff] }
  0x43   :  { %v418_v40 = vld [vmem:[#allocation2 + $0x6c0] sm:$0xff]  ;;  %517 = vmatpush.msrb.mxu2 %v354_v39  ;;  %v299_v28 = vld [vmem:[#allocation2 + $0x308] sm:$0xff] }
  0x44   :  { %v222_v41 = vld [vmem:[#allocation2 + $0xa0] sm:$0xff]  ;;  %537 = vmatpush.msrb.mxu3 %v418_v40  ;;  %v367_v29 = vld [vmem:[#allocation2 + $0x528] sm:$0xff] }
  0x45   :  { %v286_v42 = vld [vmem:[#allocation2 + $0x2a0] sm:$0xff]  ;;  %478 = vmatpush.msrb.mxu0 %v222_v41  ;;  %v431_v30 = vld [vmem:[#allocation2 + $0x728] sm:$0xff] }
  0x46   :  { %v350_v43 = vld [vmem:[#allocation2 + $0x4a0] sm:$0xff]  ;;  %498 = vmatpush.msrb.mxu1 %v286_v42  ;;  %v231_v31 = vld [vmem:[#allocation2 + $0xe8] sm:$0xff] }
  0x47   :  { %v414_v44 = vld [vmem:[#allocation2 + $0x6a0] sm:$0xff]  ;;  %518 = vmatpush.msrb.mxu2 %v350_v43  ;;  %v295_v32 = vld [vmem:[#allocation2 + $0x2e8] sm:$0xff] }
  0x48   :  { %v218_v45 = vld [vmem:[#allocation2 + $0x80] sm:$0xff]  ;;  %538 = vmatpush.msrb.mxu3 %v414_v44  ;;  %v363_v33 = vld [vmem:[#allocation2 + $0x508] sm:$0xff] }
  0x49   :  { %v282_v46 = vld [vmem:[#allocation2 + $0x280] sm:$0xff]  ;;  %479 = vmatpush.msrb.mxu0 %v218_v45  ;;  %v427_v34 = vld [vmem:[#allocation2 + $0x708] sm:$0xff] }
  0x4a   :  { %v346_v47 = vld [vmem:[#allocation2 + $0x480] sm:$0xff]  ;;  %499 = vmatpush.msrb.mxu1 %v282_v46  ;;  %v227_v35 = vld [vmem:[#allocation2 + $0xc8] sm:$0xff] }
  0x4b   :  { %v410_v48 = vld [vmem:[#allocation2 + $0x680] sm:$0xff]  ;;  %519 = vmatpush.msrb.mxu2 %v346_v47  ;;  %v291_v36 = vld [vmem:[#allocation2 + $0x2c8] sm:$0xff] }
  0x4c   :  { %v214_v49 = vld [vmem:[#allocation2 + $0x60] sm:$0xff]  ;;  %539 = vmatpush.msrb.mxu3 %v410_v48  ;;  %v359_v37 = vld [vmem:[#allocation2 + $0x4e8] sm:$0xff] }
  0x4d   :  { %v278_v50 = vld [vmem:[#allocation2 + $0x260] sm:$0xff]  ;;  %480 = vmatpush.msrb.mxu0 %v214_v49  ;;  %v423_v38 = vld [vmem:[#allocation2 + $0x6e8] sm:$0xff] }
  0x4e   :  { %v342_v51 = vld [vmem:[#allocation2 + $0x460] sm:$0xff]  ;;  %500 = vmatpush.msrb.mxu1 %v278_v50  ;;  %v223_v39 = vld [vmem:[#allocation2 + $0xa8] sm:$0xff] }
  0x4f   :  { %v406_v52 = vld [vmem:[#allocation2 + $0x660] sm:$0xff]  ;;  %520 = vmatpush.msrb.mxu2 %v342_v51  ;;  %v287_v40 = vld [vmem:[#allocation2 + $0x2a8] sm:$0xff] }
  0x50   :  { %v210_v53 = vld [vmem:[#allocation2 + $0x40] sm:$0xff]  ;;  %540 = vmatpush.msrb.mxu3 %v406_v52  ;;  %v355_v41 = vld [vmem:[#allocation2 + $0x4c8] sm:$0xff] }
  0x51   :  { %v274_v54 = vld [vmem:[#allocation2 + $0x240] sm:$0xff]  ;;  %481 = vmatpush.msrb.mxu0 %v210_v53  ;;  %v419_v42 = vld [vmem:[#allocation2 + $0x6c8] sm:$0xff] }
  0x52   :  { %v338_v55 = vld [vmem:[#allocation2 + $0x440] sm:$0xff]  ;;  %501 = vmatpush.msrb.mxu1 %v274_v54  ;;  %v219_v43 = vld [vmem:[#allocation2 + $0x88] sm:$0xff] }
  0x53   :  { %v402_v56 = vld [vmem:[#allocation2 + $0x640] sm:$0xff]  ;;  %521 = vmatpush.msrb.mxu2 %v338_v55  ;;  %v283_v44 = vld [vmem:[#allocation2 + $0x288] sm:$0xff] }
  0x54   :  { %v206_v57 = vld [vmem:[#allocation2 + $0x20] sm:$0xff]  ;;  %541 = vmatpush.msrb.mxu3 %v402_v56  ;;  %v215_v45 = vld [vmem:[#allocation2 + $0x68] sm:$0xff] }
  0x55   :  { %v270_v58 = vld [vmem:[#allocation2 + $0x220] sm:$0xff]  ;;  %482 = vmatpush.msrb.mxu0 %v206_v57  ;;  %v279_v46 = vld [vmem:[#allocation2 + $0x268] sm:$0xff] }
  0x56   :  { %v334_v59 = vld [vmem:[#allocation2 + $0x420] sm:$0xff]  ;;  %502 = vmatpush.msrb.mxu1 %v270_v58  ;;  %v211_v47 = vld [vmem:[#allocation2 + $0x48] sm:$0xff] }
  0x57   :  { %v398_v60 = vld [vmem:[#allocation2 + $0x620] sm:$0xff]  ;;  %522 = vmatpush.msrb.mxu2 %v334_v59  ;;  %v275_v48 = vld [vmem:[#allocation2 + $0x248] sm:$0xff] }
  0x58   :  { %v202_v61 = vld [vmem:[#allocation2] sm:$0xff]  ;;  %542 = vmatpush.msrb.mxu3 %v398_v60  ;;  %v351_v49 = vld [vmem:[#allocation2 + $0x4a8] sm:$0xff] }
  0x59   :  { %v266_v62 = vld [vmem:[#allocation2 + $0x200] sm:$0xff]  ;;  %483 = vmatpush.msrb.mxu0 %v202_v61  ;;  %v415_v50 = vld [vmem:[#allocation2 + $0x6a8] sm:$0xff] }
  0x5a   :  { %v330_v1 = vld [vmem:[#allocation2 + $0x400] sm:$0xff]  ;;  %503 = vmatpush.msrb.mxu1 %v266_v62  ;;  %v207_v51 = vld [vmem:[#allocation2 + $0x28] sm:$0xff] }
  0x5b   :  { %v394_v2 = vld [vmem:[#allocation2 + $0x600] sm:$0xff]  ;;  %548 = vmatpush.msra.mxu0 %v263_v63  ;;  %523 = vmatpush.msrb.mxu2 %v330_v1  ;;  %v271_v52 = vld [vmem:[#allocation2 + $0x228] sm:$0xff] }
  0x5c   :  { %568 = vmatpush.msra.mxu1 %v327_v0  ;;  %543 = vmatpush.msrb.mxu3 %v394_v2  ;;  %v347_v53 = vld [vmem:[#allocation2 + $0x488] sm:$0xff]  ;;  %v108_v1 = vld [vmem:[%s1497_s2] sm:$0xf] }
  0x5d   :  { %549 = vmatpush.msra.mxu0 %v259_v3  ;;  %588 = vmatpush.msra.mxu2 %v391_v5  ;;  %v411_v54 = vld [vmem:[#allocation2 + $0x688] sm:$0xff]  ;;  %v110_v2 = vperm.slane %v108_v1, 0  ;;  %v111_v3 = vperm.slane %v108_v1, 1 }
  0x5e   :  { %569 = vmatpush.msra.mxu1 %v323_v4  ;;  %608 = vmatpush.msra.mxu3 %v455_v6  ;;  %v203_v55 = vld [vmem:[#allocation2 + $0x8] sm:$0xff] }
  0x5f   :  { %550 = vmatpush.msra.mxu0 %v255_v7  ;;  %589 = vmatpush.msra.mxu2 %v387_v9  ;;  %v267_v56 = vld [vmem:[#allocation2 + $0x208] sm:$0xff] }
  0x60   :  { %570 = vmatpush.msra.mxu1 %v319_v8  ;;  %609 = vmatpush.msra.mxu3 %v451_v10  ;;  %v343_v57 = vld [vmem:[#allocation2 + $0x468] sm:$0xff]  ;;  %v264_v10 = vld [vmem:[#allocation2 + $0x1f0] sm:$0xff] }
  0x61   :  { %551 = vmatpush.msra.mxu0 %v251_v11  ;;  %590 = vmatpush.msra.mxu2 %v383_v13  ;;  %v407_v58 = vld [vmem:[#allocation2 + $0x668] sm:$0xff]  ;;  %v328_v11 = vld [vmem:[#allocation2 + $0x3f0] sm:$0xff]  ;;  %v113_v13 = vperm.slane %v108_v1, 3 }
  0x62   :  { %571 = vmatpush.msra.mxu1 %v315_v12  ;;  %610 = vmatpush.msra.mxu3 %v447_v14  ;;  %v339_v59 = vld [vmem:[#allocation2 + $0x448] sm:$0xff]  ;;  %v112_v12 = vperm.slane %v108_v1, 2  ;;  %v260_v14 = vld [vmem:[#allocation2 + $0x1d0] sm:$0xff] }
  0x63   :  { %552 = vmatpush.msra.mxu0 %v247_v15  ;;  %591 = vmatpush.msra.mxu2 %v379_v17  ;;  %v403_v60 = vld [vmem:[#allocation2 + $0x648] sm:$0xff]  ;;  %v324_v15 = vld [vmem:[#allocation2 + $0x3d0] sm:$0xff] }
  0x64   :  { %572 = vmatpush.msra.mxu1 %v311_v16  ;;  %611 = vmatpush.msra.mxu3 %v443_v18  ;;  %v335_v61 = vld [vmem:[#allocation2 + $0x428] sm:$0xff]  ;;  %v256_v18 = vld [vmem:[#allocation2 + $0x1b0] sm:$0xff] }
  0x65   :  { %553 = vmatpush.msra.mxu0 %v243_v19  ;;  %592 = vmatpush.msra.mxu2 %v375_v21  ;;  %v399_v62 = vld [vmem:[#allocation2 + $0x628] sm:$0xff]  ;;  %v320_v19 = vld [vmem:[#allocation2 + $0x3b0] sm:$0xff] }
  0x66   :  { %573 = vmatpush.msra.mxu1 %v307_v20  ;;  %612 = vmatpush.msra.mxu3 %v439_v22  ;;  %v331_v63 = vld [vmem:[#allocation2 + $0x408] sm:$0xff]  ;;  %v276_v1 = vld [vmem:[#allocation2 + $0x250] sm:$0xff] }
  0x67   :  { %554 = vmatpush.msra.mxu0 %v239_v23  ;;  %593 = vmatpush.msra.mxu2 %v371_v25  ;;  %v395_v0 = vld [vmem:[#allocation2 + $0x608] sm:$0xff]  ;;  %v316_v25 = vld [vmem:[#allocation2 + $0x390] sm:$0xff] }
  0x68   :  { %574 = vmatpush.msra.mxu1 %v303_v24  ;;  %613 = vmatpush.msra.mxu3 %v435_v26  ;;  %v252_v24 = vld [vmem:[#allocation2 + $0x190] sm:$0xff] }
  0x69   :  { %555 = vmatpush.msra.mxu0 %v235_v27  ;;  %594 = vmatpush.msra.mxu2 %v367_v29  ;;  %v392_v26 = vld [vmem:[#allocation2 + $0x5f0] sm:$0xff] }
  0x6a   :  { %575 = vmatpush.msra.mxu1 %v299_v28  ;;  %614 = vmatpush.msra.mxu3 %v431_v30  ;;  %v456_v27 = vld [vmem:[#allocation2 + $0x7f0] sm:$0xff] }
  0x6b   :  { %556 = vmatpush.msra.mxu0 %v231_v31  ;;  %595 = vmatpush.msra.mxu2 %v363_v33  ;;  %v312_v28 = vld [vmem:[#allocation2 + $0x370] sm:$0xff] }
  0x6c   :  { %576 = vmatpush.msra.mxu1 %v295_v32  ;;  %615 = vmatpush.msra.mxu3 %v427_v34  ;;  %v248_v29 = vld [vmem:[#allocation2 + $0x170] sm:$0xff] }
  0x6d   :  { %557 = vmatpush.msra.mxu0 %v227_v35  ;;  %596 = vmatpush.msra.mxu2 %v359_v37  ;;  %v388_v30 = vld [vmem:[#allocation2 + $0x5d0] sm:$0xff] }
  0x6e   :  { %577 = vmatpush.msra.mxu1 %v291_v36  ;;  %616 = vmatpush.msra.mxu3 %v423_v38  ;;  %v452_v31 = vld [vmem:[#allocation2 + $0x7d0] sm:$0xff] }
  0x6f   :  { %558 = vmatpush.msra.mxu0 %v223_v39  ;;  %597 = vmatpush.msra.mxu2 %v355_v41  ;;  %v244_v32 = vld [vmem:[#allocation2 + $0x150] sm:$0xff] }
  0x70   :  { %578 = vmatpush.msra.mxu1 %v287_v40  ;;  %617 = vmatpush.msra.mxu3 %v419_v42  ;;  %v308_v33 = vld [vmem:[#allocation2 + $0x350] sm:$0xff] }
  0x71   :  { %559 = vmatpush.msra.mxu0 %v219_v43  ;;  %598 = vmatpush.msra.mxu2 %v351_v49  ;;  %v384_v34 = vld [vmem:[#allocation2 + $0x5b0] sm:$0xff] }
  0x72   :  { %579 = vmatpush.msra.mxu1 %v283_v44  ;;  %618 = vmatpush.msra.mxu3 %v415_v50  ;;  %v448_v35 = vld [vmem:[#allocation2 + $0x7b0] sm:$0xff] }
  0x73   :  { %560 = vmatpush.msra.mxu0 %v215_v45  ;;  %599 = vmatpush.msra.mxu2 %v347_v53  ;;  %v240_v36 = vld [vmem:[#allocation2 + $0x130] sm:$0xff] }
  0x74   :  { %580 = vmatpush.msra.mxu1 %v279_v46  ;;  %619 = vmatpush.msra.mxu3 %v411_v54  ;;  %v304_v37 = vld [vmem:[#allocation2 + $0x330] sm:$0xff] }
  0x75   :  { %561 = vmatpush.msra.mxu0 %v211_v47  ;;  %600 = vmatpush.msra.mxu2 %v343_v57  ;;  %v380_v38 = vld [vmem:[#allocation2 + $0x590] sm:$0xff] }
  0x76   :  { %581 = vmatpush.msra.mxu1 %v275_v48  ;;  %620 = vmatpush.msra.mxu3 %v407_v58  ;;  %v444_v39 = vld [vmem:[#allocation2 + $0x790] sm:$0xff] }
  0x77   :  { %562 = vmatpush.msra.mxu0 %v207_v51  ;;  %601 = vmatpush.msra.mxu2 %v339_v59  ;;  %v236_v40 = vld [vmem:[#allocation2 + $0x110] sm:$0xff] }
  0x78   :  { %582 = vmatpush.msra.mxu1 %v271_v52  ;;  %621 = vmatpush.msra.mxu3 %v403_v60  ;;  %v300_v41 = vld [vmem:[#allocation2 + $0x310] sm:$0xff] }
  0x79   :  { %563 = vmatpush.msra.mxu0 %v203_v55  ;;  %602 = vmatpush.msra.mxu2 %v335_v61  ;;  %v376_v42 = vld [vmem:[#allocation2 + $0x570] sm:$0xff] }
  0x7a   :  { %583 = vmatpush.msra.mxu1 %v267_v56  ;;  %622 = vmatpush.msra.mxu3 %v399_v62  ;;  %v440_v43 = vld [vmem:[#allocation2 + $0x770] sm:$0xff] }
  0x7b   :  { %603 = vmatpush.msra.mxu2 %v331_v63  ;;  %v232_v44 = vld [vmem:[#allocation2 + $0xf0] sm:$0xff] }
  0x7c   :  { %623 = vmatpush.msra.mxu3 %v395_v0  ;;  %v296_v45 = vld [vmem:[#allocation2 + $0x2f0] sm:$0xff] }
  0x7d   :  { %v372_v46 = vld [vmem:[#allocation2 + $0x550] sm:$0xff] }
  0x7e   :  { %v436_v47 = vld [vmem:[#allocation2 + $0x750] sm:$0xff] }
  0x7f   :  { %v228_v48 = vld [vmem:[#allocation2 + $0xd0] sm:$0xff] }
  0x80   :  { %v292_v49 = vld [vmem:[#allocation2 + $0x2d0] sm:$0xff] }
  0x81   :  { %v368_v50 = vld [vmem:[#allocation2 + $0x530] sm:$0xff] }
  0x82   :  { %v432_v51 = vld [vmem:[#allocation2 + $0x730] sm:$0xff] }
  0x83   :  { %v224_v52 = vld [vmem:[#allocation2 + $0xb0] sm:$0xff] }
  0x84   :  { %v288_v53 = vld [vmem:[#allocation2 + $0x2b0] sm:$0xff] }
  0x85   :  { %v364_v54 = vld [vmem:[#allocation2 + $0x510] sm:$0xff] }
  0x86   :  { %v428_v55 = vld [vmem:[#allocation2 + $0x710] sm:$0xff] }
  0x87   :  { %v220_v56 = vld [vmem:[#allocation2 + $0x90] sm:$0xff] }
  0x88   :  { %v284_v57 = vld [vmem:[#allocation2 + $0x290] sm:$0xff] }
  0x89   :  { %v360_v58 = vld [vmem:[#allocation2 + $0x4f0] sm:$0xff] }
  0x8a   :  { %v424_v59 = vld [vmem:[#allocation2 + $0x6f0] sm:$0xff] }
  0x8b   :  { %v216_v60 = vld [vmem:[#allocation2 + $0x70] sm:$0xff] }
  0x8c   :  { %v280_v61 = vld [vmem:[#allocation2 + $0x270] sm:$0xff] }
  0x8d   :  { %v356_v62 = vld [vmem:[#allocation2 + $0x4d0] sm:$0xff] }
  0x8e   :  { %v420_v63 = vld [vmem:[#allocation2 + $0x6d0] sm:$0xff] }
  0x8f   :  { %v212_v0 = vld [vmem:[#allocation2 + $0x50] sm:$0xff] }
  0xa4   :  { %v135_v4 = vpop.f32.mrf.mxu0  ;;  %v155_v5 = vpop.f32.mrf.mxu1 }
  0xa5   :  { %v136_v6 = vadd.f32 %v135_v4, %v110_v2  ;;  %v156_v7 = vadd.f32 %v155_v5, %v111_v3  ;;  %v352_v2 = vld [vmem:[#allocation2 + $0x4b0] sm:$0xff] }
  0xa6   :  { %v416_v3 = vld [vmem:[#allocation2 + $0x6b0] sm:$0xff] }
  0xa7   :  { %v1264_v8 = vmax.f32 %v136_v6, 0.0  ;;  %v1266_v9 = vmax.f32 %v156_v7, 0.0  ;;  %v208_v4 = vld [vmem:[#allocation2 + $0x30] sm:$0xff] }
  0xa8   :  { %v272_v5 = vld [vmem:[#allocation2 + $0x230] sm:$0xff] }
  0xa9   :  { %484 = vmatmul.f32.vlgmr.msrb.gmra.mxu0 %v1264_v8  ;;  %504 = vmatmul.f32.vlgmr.msrb.gmra.mxu1 %v1266_v9  ;;  %v348_v6 = vld [vmem:[#allocation2 + $0x490] sm:$0xff] }
  0xaa   :  { %628 = vmatpush.msrb.mxu0 %v264_v10  ;;  %648 = vmatpush.msrb.mxu1 %v328_v11  ;;  %v412_v7 = vld [vmem:[#allocation2 + $0x690] sm:$0xff] }
  0xab   :  { %v175_v16 = vpop.f32.mrf.mxu2  ;;  %v195_v17 = vpop.f32.mrf.mxu3  ;;  %v204_v10 = vld [vmem:[#allocation2 + $0x10] sm:$0xff] }
  0xac   :  { %v176_v20 = vadd.f32 %v175_v16, %v112_v12  ;;  %v196_v21 = vadd.f32 %v195_v17, %v113_v13  ;;  %629 = vmatpush.msrb.mxu0 %v260_v14  ;;  %649 = vmatpush.msrb.mxu1 %v324_v15  ;;  %v268_v11 = vld [vmem:[#allocation2 + $0x210] sm:$0xff]  ;;  %v265_v14 = vld [vmem:[#allocation2 + $0x1f8] sm:$0xff] }
  0xad   :  { %v344_v12 = vld [vmem:[#allocation2 + $0x470] sm:$0xff]  ;;  %v329_v15 = vld [vmem:[#allocation2 + $0x3f8] sm:$0xff] }
  0xae   :  { %v1270_v22 = vmax.f32 %v176_v20, 0.0  ;;  %v1272_v23 = vmax.f32 %v196_v21, 0.0  ;;  %630 = vmatpush.msrb.mxu0 %v256_v18  ;;  %650 = vmatpush.msrb.mxu1 %v320_v19  ;;  %v408_v13 = vld [vmem:[#allocation2 + $0x670] sm:$0xff]  ;;  %v261_v18 = vld [vmem:[#allocation2 + $0x1d8] sm:$0xff] }
  0xaf   :  { %v340_v16 = vld [vmem:[#allocation2 + $0x450] sm:$0xff]  ;;  %v325_v19 = vld [vmem:[#allocation2 + $0x3d8] sm:$0xff] }
  0xb0   :  { %524 = vmatmul.f32.vlgmr.msrb.gmra.mxu2 %v1270_v22  ;;  %544 = vmatmul.f32.vlgmr.msrb.gmra.mxu3 %v1272_v23  ;;  %v404_v17 = vld [vmem:[#allocation2 + $0x650] sm:$0xff] }
  0xb1   :  { %631 = vmatpush.msrb.mxu0 %v252_v24  ;;  %651 = vmatpush.msrb.mxu1 %v316_v25  ;;  %v336_v20 = vld [vmem:[#allocation2 + $0x430] sm:$0xff]  ;;  %v257_v24 = vld [vmem:[#allocation2 + $0x1b8] sm:$0xff] }
  0xb2   :  { %668 = vmatpush.msrb.mxu2 %v392_v26  ;;  %688 = vmatpush.msrb.mxu3 %v456_v27  ;;  %v400_v21 = vld [vmem:[#allocation2 + $0x630] sm:$0xff]  ;;  %v321_v25 = vld [vmem:[#allocation2 + $0x3b8] sm:$0xff] }
  0xb3   :  { %564 = vmatmul.f32.vlgmr.msra.gmra.mxu0 %v1264_v8  ;;  %652 = vmatpush.msrb.mxu1 %v312_v28  ;;  %v332_v26 = vld [vmem:[#allocation2 + $0x410] sm:$0xff]  ;;  %v253_v28 = vld [vmem:[#allocation2 + $0x198] sm:$0xff] }
  0xb4   :  { %632 = vmatpush.msrb.mxu0 %v248_v29  ;;  %669 = vmatpush.msrb.mxu2 %v388_v30  ;;  %v396_v27 = vld [vmem:[#allocation2 + $0x610] sm:$0xff]  ;;  %v317_v29 = vld [vmem:[#allocation2 + $0x398] sm:$0xff] }
  0xb5   :  { %689 = vmatpush.msrb.mxu3 %v452_v31  ;;  %584 = vmatmul.f32.vlgmr.msra.gmra.mxu1 %v1266_v9  ;;  %v393_v30 = vld [vmem:[#allocation2 + $0x5f8] sm:$0xff] }
  0xb6   :  { %633 = vmatpush.msrb.mxu0 %v244_v32  ;;  %653 = vmatpush.msrb.mxu1 %v308_v33  ;;  %v457_v31 = vld [vmem:[#allocation2 + $0x7f8] sm:$0xff] }
  0xb7   :  { %670 = vmatpush.msrb.mxu2 %v384_v34  ;;  %690 = vmatpush.msrb.mxu3 %v448_v35  ;;  %v249_v32 = vld [vmem:[#allocation2 + $0x178] sm:$0xff] }
  0xb8   :  { %634 = vmatpush.msrb.mxu0 %v240_v36  ;;  %654 = vmatpush.msrb.mxu1 %v304_v37  ;;  %v313_v33 = vld [vmem:[#allocation2 + $0x378] sm:$0xff] }
  0xb9   :  { %671 = vmatpush.msrb.mxu2 %v380_v38  ;;  %691 = vmatpush.msrb.mxu3 %v444_v39  ;;  %v389_v34 = vld [vmem:[#allocation2 + $0x5d8] sm:$0xff] }
  0xba   :  { %604 = vmatmul.f32.vlgmr.msra.gmra.mxu2 %v1270_v22  ;;  %624 = vmatmul.f32.vlgmr.msra.gmra.mxu3 %v1272_v23  ;;  %v453_v35 = vld [vmem:[#allocation2 + $0x7d8] sm:$0xff] }
  0xbb   :  { %635 = vmatpush.msrb.mxu0 %v236_v40  ;;  %655 = vmatpush.msrb.mxu1 %v300_v41  ;;  %v245_v36 = vld [vmem:[#allocation2 + $0x158] sm:$0xff] }
  0xbc   :  { %672 = vmatpush.msrb.mxu2 %v376_v42  ;;  %692 = vmatpush.msrb.mxu3 %v440_v43  ;;  %v309_v37 = vld [vmem:[#allocation2 + $0x358] sm:$0xff] }
  0xbd   :  { %636 = vmatpush.msrb.mxu0 %v232_v44  ;;  %656 = vmatpush.msrb.mxu1 %v296_v45  ;;  %v385_v38 = vld [vmem:[#allocation2 + $0x5b8] sm:$0xff] }
  0xbe   :  { %673 = vmatpush.msrb.mxu2 %v372_v46  ;;  %693 = vmatpush.msrb.mxu3 %v436_v47  ;;  %v449_v39 = vld [vmem:[#allocation2 + $0x7b8] sm:$0xff] }
  0xbf   :  { %637 = vmatpush.msrb.mxu0 %v228_v48  ;;  %657 = vmatpush.msrb.mxu1 %v292_v49  ;;  %v241_v40 = vld [vmem:[#allocation2 + $0x138] sm:$0xff] }
  0xc0   :  { %674 = vmatpush.msrb.mxu2 %v368_v50  ;;  %694 = vmatpush.msrb.mxu3 %v432_v51  ;;  %v305_v41 = vld [vmem:[#allocation2 + $0x338] sm:$0xff] }
  0xc1   :  { %638 = vmatpush.msrb.mxu0 %v224_v52  ;;  %658 = vmatpush.msrb.mxu1 %v288_v53  ;;  %v381_v42 = vld [vmem:[#allocation2 + $0x598] sm:$0xff] }
  0xc2   :  { %675 = vmatpush.msrb.mxu2 %v364_v54  ;;  %695 = vmatpush.msrb.mxu3 %v428_v55  ;;  %v445_v43 = vld [vmem:[#allocation2 + $0x798] sm:$0xff] }
  0xc3   :  { %639 = vmatpush.msrb.mxu0 %v220_v56  ;;  %659 = vmatpush.msrb.mxu1 %v284_v57  ;;  %v237_v44 = vld [vmem:[#allocation2 + $0x118] sm:$0xff] }
  0xc4   :  { %676 = vmatpush.msrb.mxu2 %v360_v58  ;;  %696 = vmatpush.msrb.mxu3 %v424_v59  ;;  %v301_v45 = vld [vmem:[#allocation2 + $0x318] sm:$0xff] }
  0xc5   :  { %640 = vmatpush.msrb.mxu0 %v216_v60  ;;  %660 = vmatpush.msrb.mxu1 %v280_v61  ;;  %v377_v46 = vld [vmem:[#allocation2 + $0x578] sm:$0xff] }
  0xc6   :  { %677 = vmatpush.msrb.mxu2 %v356_v62  ;;  %697 = vmatpush.msrb.mxu3 %v420_v63  ;;  %v441_v47 = vld [vmem:[#allocation2 + $0x778] sm:$0xff] }
  0xc7   :  { %641 = vmatpush.msrb.mxu0 %v212_v0  ;;  %661 = vmatpush.msrb.mxu1 %v276_v1  ;;  %v233_v48 = vld [vmem:[#allocation2 + $0xf8] sm:$0xff] }
  0xc8   :  { %678 = vmatpush.msrb.mxu2 %v352_v2  ;;  %698 = vmatpush.msrb.mxu3 %v416_v3  ;;  %v297_v49 = vld [vmem:[#allocation2 + $0x2f8] sm:$0xff] }
  0xc9   :  { %642 = vmatpush.msrb.mxu0 %v208_v4  ;;  %662 = vmatpush.msrb.mxu1 %v272_v5  ;;  %v373_v50 = vld [vmem:[#allocation2 + $0x558] sm:$0xff] }
  0xca   :  { %679 = vmatpush.msrb.mxu2 %v348_v6  ;;  %699 = vmatpush.msrb.mxu3 %v412_v7  ;;  %v437_v51 = vld [vmem:[#allocation2 + $0x758] sm:$0xff] }
  0xcb   :  { %643 = vmatpush.msrb.mxu0 %v204_v10  ;;  %663 = vmatpush.msrb.mxu1 %v268_v11  ;;  %v229_v52 = vld [vmem:[#allocation2 + $0xd8] sm:$0xff] }
  0xcc   :  { %680 = vmatpush.msrb.mxu2 %v344_v12  ;;  %700 = vmatpush.msrb.mxu3 %v408_v13  ;;  %v293_v53 = vld [vmem:[#allocation2 + $0x2d8] sm:$0xff] }
  0xcd   :  { %644 = vmatmul.f32.vlgmr.msrb.gmra.mxu0 %v1264_v8  ;;  %664 = vmatmul.f32.vlgmr.msrb.gmra.mxu1 %v1266_v9  ;;  %v369_v54 = vld [vmem:[#allocation2 + $0x538] sm:$0xff] }
  0xce   :  { %708 = vmatpush.msra.mxu0 %v265_v14  ;;  %728 = vmatpush.msra.mxu1 %v329_v15  ;;  %v433_v55 = vld [vmem:[#allocation2 + $0x738] sm:$0xff] }
  0xcf   :  { %681 = vmatpush.msrb.mxu2 %v340_v16  ;;  %701 = vmatpush.msrb.mxu3 %v404_v17  ;;  %v225_v56 = vld [vmem:[#allocation2 + $0xb8] sm:$0xff] }
  0xd0   :  { %709 = vmatpush.msra.mxu0 %v261_v18  ;;  %729 = vmatpush.msra.mxu1 %v325_v19  ;;  %v289_v57 = vld [vmem:[#allocation2 + $0x2b8] sm:$0xff] }
  0xd1   :  { %682 = vmatpush.msrb.mxu2 %v336_v20  ;;  %702 = vmatpush.msrb.mxu3 %v400_v21  ;;  %v365_v58 = vld [vmem:[#allocation2 + $0x518] sm:$0xff] }
  0xd2   :  { %710 = vmatpush.msra.mxu0 %v257_v24  ;;  %730 = vmatpush.msra.mxu1 %v321_v25  ;;  %v429_v59 = vld [vmem:[#allocation2 + $0x718] sm:$0xff] }
  0xd3   :  { %683 = vmatpush.msrb.mxu2 %v332_v26  ;;  %703 = vmatpush.msrb.mxu3 %v396_v27  ;;  %v221_v60 = vld [vmem:[#allocation2 + $0x98] sm:$0xff]  ;;  %v806_v26 = vld [vmem:[%s1500_s5 + $0x70] sm:$0xff] }
  0xd4   :  { %684 = vmatmul.f32.vlgmr.msrb.gmra.mxu2 %v1270_v22  ;;  %704 = vmatmul.f32.vlgmr.msrb.gmra.mxu3 %v1272_v23  ;;  %v285_v61 = vld [vmem:[#allocation2 + $0x298] sm:$0xff]  ;;  %v822_v27 = vld [vmem:[%s1500_s5 + $0xf0] sm:$0xff] }
  0xd5   :  { %711 = vmatpush.msra.mxu0 %v253_v28  ;;  %731 = vmatpush.msra.mxu1 %v317_v29  ;;  %v361_v62 = vld [vmem:[#allocation2 + $0x4f8] sm:$0xff] }
  0xd6   :  { %748 = vmatpush.msra.mxu2 %v393_v30  ;;  %768 = vmatpush.msra.mxu3 %v457_v31  ;;  %v425_v63 = vld [vmem:[#allocation2 + $0x6f8] sm:$0xff]  ;;  %v802_v31 = vld [vmem:[%s1500_s5 + $0x50] sm:$0xff] }
  0xd7   :  { %712 = vmatpush.msra.mxu0 %v249_v32  ;;  %732 = vmatpush.msra.mxu1 %v313_v33  ;;  %v217_v0 = vld [vmem:[#allocation2 + $0x78] sm:$0xff]  ;;  %v800_v32 = vld [vmem:[%s1500_s5 + $0x40] sm:$0xff] }
  0xd8   :  { %749 = vmatpush.msra.mxu2 %v389_v34  ;;  %769 = vmatpush.msra.mxu3 %v453_v35  ;;  %v281_v1 = vld [vmem:[#allocation2 + $0x278] sm:$0xff]  ;;  %v820_v33 = vld [vmem:[%s1500_s5 + $0xe0] sm:$0xff] }
  0xd9   :  { %713 = vmatpush.msra.mxu0 %v245_v36  ;;  %733 = vmatpush.msra.mxu1 %v309_v37  ;;  %v357_v2 = vld [vmem:[#allocation2 + $0x4d8] sm:$0xff]  ;;  %v798_v36 = vld [vmem:[%s1500_s5 + $0x30] sm:$0xff] }
  0xda   :  { %750 = vmatpush.msra.mxu2 %v385_v38  ;;  %770 = vmatpush.msra.mxu3 %v449_v39  ;;  %v421_v3 = vld [vmem:[#allocation2 + $0x6d8] sm:$0xff]  ;;  %v818_v37 = vld [vmem:[%s1500_s5 + $0xd0] sm:$0xff]  ;;  %v797_v38 = vld [vmem:[%s1500_s5 + $0x28] sm:$0xff] }
  0xdb   :  { %714 = vmatpush.msra.mxu0 %v241_v40  ;;  %734 = vmatpush.msra.mxu1 %v305_v41  ;;  %v213_v4 = vld [vmem:[#allocation2 + $0x58] sm:$0xff]  ;;  %v817_v39 = vld [vmem:[%s1500_s5 + $0xc8] sm:$0xff]  ;;  %v796_v40 = vld [vmem:[%s1500_s5 + $0x20] sm:$0xff] }
  0xdc   :  { %751 = vmatpush.msra.mxu2 %v381_v42  ;;  %771 = vmatpush.msra.mxu3 %v445_v43  ;;  %v277_v5 = vld [vmem:[#allocation2 + $0x258] sm:$0xff]  ;;  %v816_v41 = vld [vmem:[%s1500_s5 + $0xc0] sm:$0xff] }
  0xdd   :  { %715 = vmatpush.msra.mxu0 %v237_v44  ;;  %735 = vmatpush.msra.mxu1 %v301_v45  ;;  %v353_v6 = vld [vmem:[#allocation2 + $0x4b8] sm:$0xff]  ;;  %v794_v44 = vld [vmem:[%s1500_s5 + $0x10] sm:$0xff] }
  0xde   :  { %752 = vmatpush.msra.mxu2 %v377_v46  ;;  %772 = vmatpush.msra.mxu3 %v441_v47  ;;  %v417_v7 = vld [vmem:[#allocation2 + $0x6b8] sm:$0xff]  ;;  %v814_v45 = vld [vmem:[%s1500_s5 + $0xb0] sm:$0xff]  ;;  %v793_v46 = vld [vmem:[%s1500_s5 + $0x8] sm:$0xff] }
  0xdf   :  { %716 = vmatpush.msra.mxu0 %v233_v48  ;;  %736 = vmatpush.msra.mxu1 %v297_v49  ;;  %v209_v10 = vld [vmem:[#allocation2 + $0x38] sm:$0xff]  ;;  %v813_v47 = vld [vmem:[%s1500_s5 + $0xa8] sm:$0xff]  ;;  %v792_v49 = vld [vmem:[%s1500_s5] sm:$0xff] }
  0xe0   :  { %753 = vmatpush.msra.mxu2 %v373_v50  ;;  %773 = vmatpush.msra.mxu3 %v437_v51  ;;  %v273_v11 = vld [vmem:[#allocation2 + $0x238] sm:$0xff]  ;;  %v812_v50 = vld [vmem:[%s1500_s5 + $0xa0] sm:$0xff] }
  0xe1   :  { %717 = vmatpush.msra.mxu0 %v229_v52  ;;  %737 = vmatpush.msra.mxu1 %v293_v53  ;;  %v349_v12 = vld [vmem:[#allocation2 + $0x498] sm:$0xff]  ;;  %v838_v52 = vld [vmem:[%s1500_s5 + $0x170] sm:$0xff] }
  0xe2   :  { %754 = vmatpush.msra.mxu2 %v369_v54  ;;  %774 = vmatpush.msra.mxu3 %v433_v55  ;;  %v413_v13 = vld [vmem:[#allocation2 + $0x698] sm:$0xff]  ;;  %v810_v53 = vld [vmem:[%s1500_s5 + $0x90] sm:$0xff]  ;;  %v837_v54 = vld [vmem:[%s1500_s5 + $0x168] sm:$0xff] }
  0xe3   :  { %718 = vmatpush.msra.mxu0 %v225_v56  ;;  %738 = vmatpush.msra.mxu1 %v289_v57  ;;  %v205_v14 = vld [vmem:[#allocation2 + $0x18] sm:$0xff]  ;;  %v809_v55 = vld [vmem:[%s1500_s5 + $0x88] sm:$0xff]  ;;  %v836_v56 = vld [vmem:[%s1500_s5 + $0x160] sm:$0xff] }
  0xe4   :  { %755 = vmatpush.msra.mxu2 %v365_v58  ;;  %775 = vmatpush.msra.mxu3 %v429_v59  ;;  %v269_v15 = vld [vmem:[#allocation2 + $0x218] sm:$0xff]  ;;  %v1396_v57 = vld [vmem:[%s1499_s4] sm:$0xf] }
  0xe5   :  { %719 = vmatpush.msra.mxu0 %v221_v60  ;;  %739 = vmatpush.msra.mxu1 %v285_v61  ;;  %v345_v16 = vld [vmem:[#allocation2 + $0x478] sm:$0xff]  ;;  %v808_v58 = vld [vmem:[%s1500_s5 + $0x80] sm:$0xff]  ;;  %v460_v60 = vperm.slane %v1396_v57, 0  ;;  %v834_v61 = vld [vmem:[%s1500_s5 + $0x150] sm:$0xff] }
  0xe6   :  { %756 = vmatpush.msra.mxu2 %v361_v62  ;;  %776 = vmatpush.msra.mxu3 %v425_v63  ;;  %v409_v17 = vld [vmem:[#allocation2 + $0x678] sm:$0xff] }
  0xe7   :  { %720 = vmatpush.msra.mxu0 %v217_v0  ;;  %740 = vmatpush.msra.mxu1 %v281_v1  ;;  %v341_v18 = vld [vmem:[#allocation2 + $0x458] sm:$0xff]  ;;  %v833_v0 = vld [vmem:[%s1500_s5 + $0x148] sm:$0xff]  ;;  %v832_v1 = vld [vmem:[%s1500_s5 + $0x140] sm:$0xff] }
  0xe8   :  { %757 = vmatpush.msra.mxu2 %v357_v2  ;;  %777 = vmatpush.msra.mxu3 %v421_v3  ;;  %v405_v19 = vld [vmem:[#allocation2 + $0x658] sm:$0xff] }
  0xe9   :  { %721 = vmatpush.msra.mxu0 %v213_v4  ;;  %741 = vmatpush.msra.mxu1 %v277_v5  ;;  %v807_v20 = vld [vmem:[%s1500_s5 + $0x78] sm:$0xff]  ;;  %v830_v5 = vld [vmem:[%s1500_s5 + $0x130] sm:$0xff] }
  0xea   :  { %758 = vmatpush.msra.mxu2 %v353_v6  ;;  %778 = vmatpush.msra.mxu3 %v417_v7  ;;  %v823_v21 = vld [vmem:[%s1500_s5 + $0xf8] sm:$0xff]  ;;  %v829_v6 = vld [vmem:[%s1500_s5 + $0x128] sm:$0xff] }
  0xeb   :  { %722 = vmatpush.msra.mxu0 %v209_v10  ;;  %742 = vmatpush.msra.mxu1 %v273_v11  ;;  %v337_v24 = vld [vmem:[#allocation2 + $0x438] sm:$0xff]  ;;  %v461_v10 = vperm.slane %v1396_v57, 1 }
  0xec   :  { %759 = vmatpush.msra.mxu2 %v349_v12  ;;  %779 = vmatpush.msra.mxu3 %v413_v13  ;;  %v401_v25 = vld [vmem:[#allocation2 + $0x638] sm:$0xff]  ;;  %v828_v12 = vld [vmem:[%s1500_s5 + $0x120] sm:$0xff] }
  0xed   :  { %723 = vmatpush.msra.mxu0 %v205_v14  ;;  %743 = vmatpush.msra.mxu1 %v269_v15  ;;  %v333_v28 = vld [vmem:[#allocation2 + $0x418] sm:$0xff] }
  0xee   :  { %760 = vmatpush.msra.mxu2 %v345_v16  ;;  %780 = vmatpush.msra.mxu3 %v409_v17  ;;  %v397_v29 = vld [vmem:[#allocation2 + $0x618] sm:$0xff] }
  0xef   :  { %724 = vmatmul.f32.vlgmr.msra.gmra.mxu0 %v1264_v8  ;;  %744 = vmatmul.f32.vlgmr.msra.gmra.mxu1 %v1266_v9  ;;  %v805_v8 = vld [vmem:[%s1500_s5 + $0x68] sm:$0xff]  ;;  %v804_v9 = vld [vmem:[%s1500_s5 + $0x60] sm:$0xff]  ;;  %v803_v30 = vld [vmem:[%s1500_s5 + $0x58] sm:$0xff] }
  0xf0   :  { %761 = vmatpush.msra.mxu2 %v341_v18  ;;  %781 = vmatpush.msra.mxu3 %v405_v19  ;;  %v799_v34 = vld [vmem:[%s1500_s5 + $0x38] sm:$0xff] }
  0xf1   :  { %860 = vmatpush.msrb.mxu0 %v807_v20  ;;  %880 = vmatpush.msrb.mxu1 %v823_v21  ;;  %v819_v35 = vld [vmem:[%s1500_s5 + $0xd8] sm:$0xff]  ;;  %v826_v20 = vld [vmem:[%s1500_s5 + $0x110] sm:$0xff] }
  0xf2   :  { %762 = vmatpush.msra.mxu2 %v337_v24  ;;  %782 = vmatpush.msra.mxu3 %v401_v25  ;;  %v795_v42 = vld [vmem:[%s1500_s5 + $0x18] sm:$0xff]  ;;  %v825_v24 = vld [vmem:[%s1500_s5 + $0x108] sm:$0xff]  ;;  %v824_v25 = vld [vmem:[%s1500_s5 + $0x100] sm:$0xff] }
  0xf3   :  { %861 = vmatpush.msrb.mxu0 %v806_v26  ;;  %881 = vmatpush.msrb.mxu1 %v822_v27  ;;  %v815_v43 = vld [vmem:[%s1500_s5 + $0xb8] sm:$0xff] }
  0xf4   :  { %763 = vmatpush.msra.mxu2 %v333_v28  ;;  %783 = vmatpush.msra.mxu3 %v397_v29  ;;  %v839_v48 = vld [vmem:[%s1500_s5 + $0x178] sm:$0xff]  ;;  %v854_v29 = vld [vmem:[%s1500_s5 + $0x1f0] sm:$0xff] }
  0xf5   :  { %764 = vmatmul.f32.vlgmr.msra.gmra.mxu2 %v1270_v22  ;;  %784 = vmatmul.f32.vlgmr.msra.gmra.mxu3 %v1272_v23  ;;  %v801_v22 = vld [vmem:[%s1500_s5 + $0x48] sm:$0xff]  ;;  %v811_v51 = vld [vmem:[%s1500_s5 + $0x98] sm:$0xff] }
  0xf6   :  { %862 = vmatpush.msrb.mxu0 %v805_v8  ;;  %v821_v23 = vld [vmem:[%s1500_s5 + $0xe8] sm:$0xff]  ;;  %900 = vmatpush.msrb.mxu2 %v839_v48  ;;  %v835_v59 = vld [vmem:[%s1500_s5 + $0x158] sm:$0xff]  ;;  %v842_v48 = vld [vmem:[%s1500_s5 + $0x190] sm:$0xff] }
  0xf7   :  { %882 = vmatpush.msrb.mxu1 %v821_v23  ;;  %v831_v2 = vld [vmem:[%s1500_s5 + $0x138] sm:$0xff] }
  0xf8   :  { %863 = vmatpush.msrb.mxu0 %v804_v9  ;;  %901 = vmatpush.msrb.mxu2 %v838_v52  ;;  %v827_v18 = vld [vmem:[%s1500_s5 + $0x118] sm:$0xff]  ;;  %v840_v52 = vld [vmem:[%s1500_s5 + $0x180] sm:$0xff] }
  0xf9   :  { %883 = vmatpush.msrb.mxu1 %v820_v33  ;;  %v855_v28 = vld [vmem:[%s1500_s5 + $0x1f8] sm:$0xff]  ;;  %v849_v33 = vld [vmem:[%s1500_s5 + $0x1c8] sm:$0xff] }
  0xfa   :  { %864 = vmatpush.msrb.mxu0 %v803_v30  ;;  %902 = vmatpush.msrb.mxu2 %v837_v54  ;;  %v853_v30 = vld [vmem:[%s1500_s5 + $0x1e8] sm:$0xff]  ;;  %v851_v23 = vld [vmem:[%s1500_s5 + $0x1d8] sm:$0xff] }
  0xfb   :  { %884 = vmatpush.msrb.mxu1 %v819_v35  ;;  %920 = vmatpush.msrb.mxu3 %v855_v28  ;;  %v462_v35 = vperm.slane %v1396_v57, 2 }
  0xfc   :  { %865 = vmatpush.msrb.mxu0 %v802_v31  ;;  %903 = vmatpush.msrb.mxu2 %v836_v56 }
  0xfd   :  { %885 = vmatpush.msrb.mxu1 %v818_v37  ;;  %921 = vmatpush.msrb.mxu3 %v854_v29  ;;  %v847_v37 = vld [vmem:[%s1500_s5 + $0x1b8] sm:$0xff] }
  0xfe   :  { %866 = vmatpush.msrb.mxu0 %v801_v22  ;;  %904 = vmatpush.msrb.mxu2 %v835_v59  ;;  %v852_v22 = vld [vmem:[%s1500_s5 + $0x1e0] sm:$0xff] }
  0xff   :  { %886 = vmatpush.msrb.mxu1 %v817_v39  ;;  %922 = vmatpush.msrb.mxu3 %v853_v30  ;;  %v845_v39 = vld [vmem:[%s1500_s5 + $0x1a8] sm:$0xff] }
 0x100   :  { %867 = vmatpush.msrb.mxu0 %v800_v32  ;;  %905 = vmatpush.msrb.mxu2 %v834_v61  ;;  %v850_v32 = vld [vmem:[%s1500_s5 + $0x1d0] sm:$0xff] }
 0x101   :  { %887 = vmatpush.msrb.mxu1 %v816_v41  ;;  %923 = vmatpush.msrb.mxu3 %v852_v22  ;;  %v844_v41 = vld [vmem:[%s1500_s5 + $0x1a0] sm:$0xff] }
 0x102   :  { %868 = vmatpush.msrb.mxu0 %v799_v34  ;;  %906 = vmatpush.msrb.mxu2 %v833_v0  ;;  %v848_v34 = vld [vmem:[%s1500_s5 + $0x1c0] sm:$0xff] }
 0x103   :  { %888 = vmatpush.msrb.mxu1 %v815_v43  ;;  %924 = vmatpush.msrb.mxu3 %v851_v23  ;;  %v964_v0 = vld [vmem:[%s1501_s6] ss:$0 sm:$0xff] }
 0x104   :  { %869 = vmatpush.msrb.mxu0 %v798_v36  ;;  %907 = vmatpush.msrb.mxu2 %v832_v1 }
 0x105   :  { %889 = vmatpush.msrb.mxu1 %v814_v45  ;;  %925 = vmatpush.msrb.mxu3 %v850_v32  ;;  %v843_v45 = vld [vmem:[%s1500_s5 + $0x198] sm:$0xff] }
 0x106   :  { %870 = vmatpush.msrb.mxu0 %v797_v38  ;;  %908 = vmatpush.msrb.mxu2 %v831_v2  ;;  %v846_v38 = vld [vmem:[%s1500_s5 + $0x1b0] sm:$0xff] }
 0x107   :  { %890 = vmatpush.msrb.mxu1 %v813_v47  ;;  %926 = vmatpush.msrb.mxu3 %v849_v33 }
 0x108   :  { %871 = vmatpush.msrb.mxu0 %v796_v40  ;;  %909 = vmatpush.msrb.mxu2 %v830_v5 }
 0x109   :  { %891 = vmatpush.msrb.mxu1 %v812_v50  ;;  %927 = vmatpush.msrb.mxu3 %v848_v34  ;;  %v841_v50 = vld [vmem:[%s1500_s5 + $0x188] sm:$0xff]  ;;  %s1022_s5 = smov [#allocation5]  }
 0x10a   :  { %872 = vmatpush.msrb.mxu0 %v795_v42  ;;  %910 = vmatpush.msrb.mxu2 %v829_v6  ;;  %s948_s14 = sshll.u32 %s1022_s5, 4  ;;  %s949_s14 = int_to_ptr.vmem [resolvable:$true] %s948_s14 }
 0x10b   :  { %892 = vmatpush.msrb.mxu1 %v811_v51  ;;  %928 = vmatpush.msrb.mxu3 %v847_v37 }
 0x10c   :  { %873 = vmatpush.msrb.mxu0 %v794_v44  ;;  %911 = vmatpush.msrb.mxu2 %v828_v12 }
 0x10d   :  { %893 = vmatpush.msrb.mxu1 %v810_v53  ;;  %929 = vmatpush.msrb.mxu3 %v846_v38  ;;  %v463_v53 = vperm.slane %v1396_v57, 3 }
 0x10e   :  { %874 = vmatpush.msrb.mxu0 %v793_v46  ;;  %912 = vmatpush.msrb.mxu2 %v827_v18 }
 0x10f   :  { %894 = vmatpush.msrb.mxu1 %v809_v55  ;;  %930 = vmatpush.msrb.mxu3 %v845_v39 }
 0x110   :  { %875 = vmatpush.msrb.mxu0 %v792_v49  ;;  %913 = vmatpush.msrb.mxu2 %v826_v20 }
 0x111   :  { %895 = vmatpush.msrb.mxu1 %v808_v58  ;;  %931 = vmatpush.msrb.mxu3 %v844_v41 }
 0x112   :  { %914 = vmatpush.msrb.mxu2 %v825_v24 }
 0x113   :  { %932 = vmatpush.msrb.mxu3 %v843_v45 }
 0x114   :  { %915 = vmatpush.msrb.mxu2 %v824_v25 }
 0x115   :  { %933 = vmatpush.msrb.mxu3 %v842_v48 }
 0x117   :  { %934 = vmatpush.msrb.mxu3 %v841_v50 }
 0x119   :  { %935 = vmatpush.msrb.mxu3 %v840_v52 }
 0x126   :  { %v485_v62 = vpop.f32.mrf.mxu0  ;;  %v505_v3 = vpop.f32.mrf.mxu1 }
 0x127   :  { %v486_v63 = vadd.f32 %v485_v62, %v460_v60 }
 0x129   :  { %v506_v4 = vadd.f32 %v505_v3, %v486_v63 }
 0x130   :  { %v565_v13 = vpop.f32.mrf.mxu0 }
 0x131   :  { %v566_v16 = vadd.f32 %v565_v13, %v461_v10 }
 0x132   :  { %v585_v19 = vpop.f32.mrf.mxu1 }
 0x133   :  { %v525_v7 = vpop.f32.mrf.mxu2  ;;  %v545_v14 = vpop.f32.mrf.mxu3  ;;  %v586_v21 = vadd.f32 %v585_v19, %v566_v16 }
 0x134   :  { %v526_v11 = vadd.f32 %v525_v7, %v506_v4 }
 0x136   :  { %v546_v15 = vadd.f32 %v545_v14, %v526_v11 }
 0x138   :  { %v788_v17 = vmax.f32 %v546_v15, 0.0 }
 0x13a   :  { %876 = vmatmul.f32.vlgmr.msrb.gmra.mxu0 %v788_v17 }
 0x13d   :  { %v605_v26 = vpop.f32.mrf.mxu2  ;;  %v625_v8 = vpop.f32.mrf.mxu3 }
 0x13e   :  { %v606_v27 = vadd.f32 %v605_v26, %v586_v21 }
 0x140   :  { %v626_v9 = vadd.f32 %v625_v8, %v606_v27 }
 0x142   :  { %v789_v31 = vmax.f32 %v626_v9, 0.0 }
 0x144   :  { %896 = vmatmul.f32.vlgmr.msrb.gmra.mxu1 %v789_v31 }
 0x14a   :  { %v645_v36 = vpop.f32.mrf.mxu0  ;;  %v665_v42 = vpop.f32.mrf.mxu1 }
 0x14b   :  { %v646_v40 = vadd.f32 %v645_v36, %v462_v35 }
 0x14d   :  { %v666_v43 = vadd.f32 %v665_v42, %v646_v40 }
 0x157   :  { %v685_v44 = vpop.f32.mrf.mxu2  ;;  %v705_v47 = vpop.f32.mrf.mxu3 }
 0x158   :  { %v686_v46 = vadd.f32 %v685_v44, %v666_v43 }
 0x15a   :  { %v706_v49 = vadd.f32 %v705_v47, %v686_v46 }
 0x15c   :  { %v790_v51 = vmax.f32 %v706_v49, 0.0 }
 0x15e   :  { %916 = vmatmul.f32.vlgmr.msrb.gmra.mxu2 %v790_v51 }
 0x16c   :  { %v725_v54 = vpop.f32.mrf.mxu0  ;;  %v745_v56 = vpop.f32.mrf.mxu1 }
 0x16d   :  { %v726_v55 = vadd.f32 %v725_v54, %v463_v53 }
 0x16f   :  { %v746_v58 = vadd.f32 %v745_v56, %v726_v55 }
 0x178   :  { %v765_v59 = vpop.f32.mrf.mxu2  ;;  %v785_v61 = vpop.f32.mrf.mxu3 }
 0x179   :  { %v766_v60 = vadd.f32 %v765_v59, %v746_v58 }
 0x17b   :  { %v786_v62 = vadd.f32 %v785_v61, %v766_v60 }
 0x17d   :  { %v791_v63 = vmax.f32 %v786_v62, 0.0 }
 0x17f   :  { %936 = vmatmul.f32.vlgmr.msrb.gmra.mxu3 %v791_v63 }
 0x1b7   :  { %v877_v1 = vpop.f32.mrf.mxu0 }
 0x1b8   :  { %v878_v3 = vadd.f32 %v964_v0, %v877_v1 }
 0x1c1   :  { %v897_v2 = vpop.f32.mrf.mxu1 }
 0x1c2   :  { %v898_v5 = vadd.f32 %v897_v2, %v878_v3 }
 0x1e1   :  { %v917_v4 = vpop.f32.mrf.mxu2 }
 0x1e2   :  { %v918_v57 = vadd.f32 %v917_v4, %v898_v5 }
 0x202   :  { %v937_v6 = vpop.f32.mrf.mxu3 }
 0x203   :  { %v938_v7 = vadd.f32 %v937_v6, %v918_v57 }
 0x205   :  { %965 = vtanh.f32 %v938_v7 }
 0x20b   :  { %v966_v10 = vpop.eup %965 }
 0x20c   :  { %942 = vst.msk [vmem:[#allocation5] sm:$0xff] %vm941_vm0, %v966_v10 }
 0x20d   :  { %953 = dma.vmem_to_hbm [thread:$0]  %s949_s14, 128, %s951_s16, [#allocation4]  }
 0x20e   :  { %1017 = dma.done.wait [#allocation4], 128  }
 0x20f   :  { %1018 = vsyncadd [#allocation4], 4294967168 }
 0x210   :  { %958 = vsyncpa [#allocation3], 1 }
 0x211   :  { %959 = vsyncpa [#allocation4], 1 }

</bundles_post_ra>
